<compile_context>
chip_gen: v7x
topology: tpu7x:2x2x1
jax: 0.10.0
libtpu: 0.0.40
codegen_flags: <defaults>
</compile_context>

<pallas_src>
import jax
import jax.numpy as jnp
from jax.experimental import pallas as pl
from jax.experimental.pallas import tpu as pltpu


def convlstm_kernel(w_ref, xs_ref, c_ref, h_out_ref, c_out_ref):
    """One ConvLSTM step for one batch element (transposed, lane-dense layout).

    w_ref  : (4*Ch, K_pad)  fused (conv_x|conv_h) weights^T, bias as a K row
    xs_ref : (K_pad, Mb)    im2col([x, h_prev])^T (+ ones row for the bias)
    c_ref  : (Ch, Mb)       previous cell state (spatial positions on lanes)
    h_out  : (Ch, Mb)       new hidden state
    c_out  : (Ch, Mb)       new cell state
    """
    Ch = c_ref.shape[0]

    # gates = W_fused @ im2col([x, h]) + bias  -- a single MXU matmul
    # (K ~= 128; the bias rides the ones row for free).
    # TODO(synk): cast operands to bf16 for 2x MXU rate on v6e/v7x once
    # Ch/H/W grow (requires relaxing the f32 test tolerance).
    gates = jnp.dot(w_ref[...], xs_ref[...],
                    preferred_element_type=jnp.float32)        # (4*Ch, Mb)

    # torch.chunk(gates, 4, dim=channels) -> i, f, g, o.  No activation on
    # the gates, exactly like the reference module.  Each slice is a
    # full-lane (Ch, Mb) sublane slab (no lane shuffles).
    i = gates[0 * Ch:1 * Ch, :]
    f = gates[1 * Ch:2 * Ch, :]
    g = gates[2 * Ch:3 * Ch, :]
    o = gates[3 * Ch:4 * Ch, :]

    c_prev = c_ref[...].astype(jnp.float32)
    c_new = c_prev * f + i * g
    h_new = jnp.tanh(c_new) * o

    # Lane-dense stores: last dim Mb is a multiple of 128 -> unmasked vst.
    c_out_ref[...] = c_new.astype(c_out_ref.dtype)
    h_out_ref[...] = h_new.astype(h_out_ref.dtype)


def convlstm_step(x_nhwc, h_nhwc, c_nhwc, wx_hwio, wh_hwio, bias):
    """Runs one ConvLSTM cell step. All tensors NHWC / HWIO, float32."""
    B, H, W, Cin = x_nhwc.shape
    Ch = h_nhwc.shape[-1]
    C = Cin + Ch
    K = 9 * C                                   # 3x3 taps * fused channels
    K_pad = pl.cdiv(K + 1, 128) * 128           # +1 bias row, padded to 128
    M = B * H * W
    assert wx_hwio.shape == (3, 3, Cin, 4 * Ch)
    assert wh_hwio.shape == (3, 3, Ch, 4 * Ch)

    # ---- wrapper-side layout plumbing (conv math itself stays in-kernel) ----
    # Fuse x/h along channels so conv_x + conv_h becomes a single conv, pad
    # for SAME 3x3, and build the transposed im2col operand with a trailing
    # ones row (bias) and zero padding up to K_pad.
    xh = jnp.concatenate([x_nhwc, h_nhwc], axis=-1)            # (B,H,W,C)
    xh_p = jnp.pad(xh, ((0, 0), (1, 1), (1, 1), (0, 0)))
    patches = jnp.stack(
        [xh_p[:, ky:ky + H, kx:kx + W, :] for ky in range(3) for kx in range(3)],
        axis=3)                                                # (B,H,W,9,C)
    xs = patches.reshape(M, K)
    xs_aug = jnp.concatenate(
        [xs, jnp.ones((M, 1), xs.dtype),
         jnp.zeros((M, K_pad - K - 1), xs.dtype)], axis=1)     # (M, K_pad)
    xsT = xs_aug.T                                             # (K_pad, M)

    # Fused weights, tap-major rows (tap = ky*3+kx, then channel), bias folded
    # in as the (K)-th row, zero pad to K_pad, then transpose.
    w_fused = jnp.concatenate([wx_hwio, wh_hwio], axis=2).reshape(K, 4 * Ch)
    w_aug = jnp.concatenate(
        [w_fused, bias.reshape(1, 4 * Ch),
         jnp.zeros((K_pad - K - 1, 4 * Ch), w_fused.dtype)], axis=0)
    wT = w_aug.T                                               # (4*Ch, K_pad)

    cT = c_nhwc.reshape(M, Ch).T                               # (Ch, M)

    # One batch element per grid step when that keeps blocks lane-dense
    # (Mb multiple of 128); otherwise fall back to one full-array block.
    if (H * W) % 128 == 0:
        n_blk, Mb = B, H * W
    else:
        n_blk, Mb = 1, M   # still correct; stores may be masked for odd shapes

    out_shape = (jax.ShapeDtypeStruct((Ch, M), x_nhwc.dtype),
                 jax.ShapeDtypeStruct((Ch, M), x_nhwc.dtype))

    hT, cT_new = pl.pallas_call(
        convlstm_kernel,
        out_shape=out_shape,
        grid_spec=pltpu.PrefetchScalarGridSpec(
            num_scalar_prefetch=0,
            grid=(n_blk,),
            in_specs=[
                pl.BlockSpec((4 * Ch, K_pad), lambda i: (0, 0)),   # weights
                pl.BlockSpec((K_pad, Mb), lambda i: (0, i)),       # im2col^T
                pl.BlockSpec((Ch, Mb), lambda i: (0, i)),          # c_prev^T
            ],
            out_specs=[
                pl.BlockSpec((Ch, Mb), lambda i: (0, i)),          # h^T
                pl.BlockSpec((Ch, Mb), lambda i: (0, i)),          # c^T
            ],
        ),
        compiler_params=pltpu.CompilerParams(
            dimension_semantics=("parallel",),        # 2nd TC on v7x
            vmem_limit_bytes=32 * 1024 * 1024),       # sized for v7x (64 MiB)
    )(wT, xsT, cT)

    # (Ch, M) -> NHWC (layout plumbing in the wrapper).
    h_new = hT.T.reshape(B, H, W, Ch)
    c_new = cT_new.T.reshape(B, H, W, Ch)
    return h_new, c_new


def convlstm_reference(x_nhwc, h_nhwc, c_nhwc, wx_hwio, wh_hwio, bias):
    """Pure-JAX reference (lax conv) for correctness checking."""
    dn = jax.lax.conv_dimension_numbers(x_nhwc.shape, wx_hwio.shape,
                                        ('NHWC', 'HWIO', 'NHWC'))
    gx = jax.lax.conv_general_dilated(x_nhwc, wx_hwio, (1, 1), 'SAME',
                                      dimension_numbers=dn)
    dn_h = jax.lax.conv_dimension_numbers(h_nhwc.shape, wh_hwio.shape,
                                          ('NHWC', 'HWIO', 'NHWC'))
    gh = jax.lax.conv_general_dilated(h_nhwc, wh_hwio, (1, 1), 'SAME',
                                      dimension_numbers=dn_h)
    gates = gx + gh + bias
    Ch = h_nhwc.shape[-1]
    i = gates[..., 0 * Ch:1 * Ch]
    f = gates[..., 1 * Ch:2 * Ch]
    g = gates[..., 2 * Ch:3 * Ch]
    o = gates[..., 3 * Ch:4 * Ch]
    c_new = c_nhwc * f + i * g
    h_new = jnp.tanh(c_new) * o
    return h_new, c_new


if __name__ == "__main__":
    B, Cin, Ch, H, W = 2, 4, 8, 16, 16

    key = jax.random.PRNGKey(0)
    kx_, kh_, kc_, kwx, kwh, kb = jax.random.split(key, 6)

    # Construct in PyTorch conventions (NCHW inputs, OIHW weights), then
    # convert to the kernel's NHWC / HWIO layout.
    x_nchw = jax.random.normal(kx_, (B, Cin, H, W), jnp.float32)
    h0_nchw = jax.random.normal(kh_, (B, Ch, H, W), jnp.float32)
    c0_nchw = jax.random.normal(kc_, (B, Ch, H, W), jnp.float32)
    wx_oihw = 0.1 * jax.random.normal(kwx, (4 * Ch, Cin, 3, 3), jnp.float32)
    wh_oihw = 0.1 * jax.random.normal(kwh, (4 * Ch, Ch, 3, 3), jnp.float32)
    bias = 0.1 * jax.random.normal(kb, (4 * Ch,), jnp.float32)

    x = jnp.transpose(x_nchw, (0, 2, 3, 1))     # NCHW -> NHWC
    h0 = jnp.transpose(h0_nchw, (0, 2, 3, 1))
    c0 = jnp.transpose(c0_nchw, (0, 2, 3, 1))
    wx = jnp.transpose(wx_oihw, (2, 3, 1, 0))   # OIHW -> HWIO
    wh = jnp.transpose(wh_oihw, (2, 3, 1, 0))

    h1, c1 = convlstm_step(x, h0, c0, wx, wh, bias)
    jax.block_until_ready((h1, c1))

    h1_ref, c1_ref = convlstm_reference(x, h0, c0, wx, wh, bias)
    assert jnp.allclose(h1, h1_ref, atol=1e-4, rtol=1e-4), "h mismatch"
    assert jnp.allclose(c1, c1_ref, atol=1e-4, rtol=1e-4), "c mismatch"

    print("KERNEL_OK")
</pallas_src>

<mosaic_0001>
module attributes {stable_mosaic.version = 11 : i64} {
  func.func @convlstm_kernel(%arg0: i32, %arg1: memref<32x128xf32, #tpu.memory_space<vmem>>, %arg2: memref<128x256xf32, #tpu.memory_space<vmem>>, %arg3: memref<8x256xf32, #tpu.memory_space<vmem>>, %arg4: memref<8x256xf32, #tpu.memory_space<vmem>>, %arg5: memref<8x256xf32, #tpu.memory_space<vmem>>) attributes {dimension_semantics = [#tpu.dimension_semantics<parallel>], iteration_bounds = array<i64: 2>, scalar_prefetch = 0 : i64, scratch_operands = 0 : i64, tpu.core_type = #tpu.core_type<tc>, window_params = [{pipeline_mode = #tpu.pipeline_mode<synchronous>, transform_indices = @transform_0, window_bounds = array<i64: 32, 128>}, {transform_indices = @transform_1, window_bounds = array<i64: 128, 256>}, {transform_indices = @transform_2, window_bounds = array<i64: 8, 256>}, {transform_indices = @transform_3, window_bounds = array<i64: 8, 256>}, {transform_indices = @transform_4, window_bounds = array<i64: 8, 256>}]} {
    %c0 = arith.constant 0 : index
    %c0_0 = arith.constant 0 : index
    %0 = vector.load %arg1[%c0, %c0_0] : memref<32x128xf32, #tpu.memory_space<vmem>>, vector<32x128xf32>
    %c0_1 = arith.constant 0 : index
    %c0_2 = arith.constant 0 : index
    %1 = vector.load %arg2[%c0_1, %c0_2] : memref<128x256xf32, #tpu.memory_space<vmem>>, vector<128x256xf32>
    %cst = arith.constant dense<0.000000e+00> : vector<32x256xf32>
    %2 = tpu.matmul %0, %1, %cst {dimension_numbers = #tpu.dot_dimension_numbers<[1], [0], [0], [1], [0, 0, 1, 1], [], []>} : vector<32x128xf32>, vector<128x256xf32>, vector<32x256xf32> -> vector<32x256xf32>
    %3 = vector.extract_strided_slice %2 {offsets = [0, 0], sizes = [8, 256], strides = [1, 1]} : vector<32x256xf32> to vector<8x256xf32>
    %4 = vector.extract_strided_slice %2 {offsets = [8, 0], sizes = [8, 256], strides = [1, 1]} : vector<32x256xf32> to vector<8x256xf32>
    %5 = vector.extract_strided_slice %2 {offsets = [16, 0], sizes = [8, 256], strides = [1, 1]} : vector<32x256xf32> to vector<8x256xf32>
    %6 = vector.extract_strided_slice %2 {offsets = [24, 0], sizes = [8, 256], strides = [1, 1]} : vector<32x256xf32> to vector<8x256xf32>
    %c0_3 = arith.constant 0 : index
    %c0_4 = arith.constant 0 : index
    %7 = vector.load %arg3[%c0_3, %c0_4] : memref<8x256xf32, #tpu.memory_space<vmem>>, vector<8x256xf32>
    %8 = arith.mulf %7, %4 : vector<8x256xf32>
    %9 = arith.mulf %3, %5 : vector<8x256xf32>
    %10 = arith.addf %8, %9 : vector<8x256xf32>
    %11 = math.tanh %10 : vector<8x256xf32>
    %12 = arith.mulf %11, %6 : vector<8x256xf32>
    %c0_5 = arith.constant 0 : index
    %c0_6 = arith.constant 0 : index
    %13 = vector.load %arg5[%c0_5, %c0_6] : memref<8x256xf32, #tpu.memory_space<vmem>>, vector<8x256xf32>
    tpu.vector_store %arg5[%c0_5, %c0_6], %10 {strides = array<i32>} : memref<8x256xf32, #tpu.memory_space<vmem>>, vector<8x256xf32>,
    %c0_7 = arith.constant 0 : index
    %c0_8 = arith.constant 0 : index
    %14 = vector.load %arg4[%c0_7, %c0_8] : memref<8x256xf32, #tpu.memory_space<vmem>>, vector<8x256xf32>
    tpu.vector_store %arg4[%c0_7, %c0_8], %12 {strides = array<i32>} : memref<8x256xf32, #tpu.memory_space<vmem>>, vector<8x256xf32>,
    return
  }
  func.func @transform_0(%arg0: i32) -> (i32, i32) {
    %c0_i32 = arith.constant 0 : i32
    %c0_i32_0 = arith.constant 0 : i32
    %c0_i32_1 = arith.constant 0 : i32
    return %c0_i32, %c0_i32_0 : i32, i32
  }
  func.func @transform_1(%arg0: i32) -> (i32, i32) {
    %c0_i32 = arith.constant 0 : i32
    %c0_i32_0 = arith.constant 0 : i32
    return %c0_i32, %arg0 : i32, i32
  }
  func.func @transform_2(%arg0: i32) -> (i32, i32) {
    %c0_i32 = arith.constant 0 : i32
    %c0_i32_0 = arith.constant 0 : i32
    return %c0_i32, %arg0 : i32, i32
  }
  func.func @transform_3(%arg0: i32) -> (i32, i32) {
    %c0_i32 = arith.constant 0 : i32
    %c0_i32_0 = arith.constant 0 : i32
    return %c0_i32, %arg0 : i32, i32
  }
  func.func @transform_4(%arg0: i32) -> (i32, i32) {
    %c0_i32 = arith.constant 0 : i32
    %c0_i32_0 = arith.constant 0 : i32
    return %c0_i32, %arg0 : i32, i32
  }
}

</mosaic_0001>

<bundles_post_ra>
// kernel: tpu_custom_call.1
= control target key start
LH: loop header
LB: loop body
LE: loop exit
PB: predicated region body
PF: predicated region fallthrough
CT: control target
= control target key end

     0   :  { %s1291_s0 = inlined_call_operand.hbm [shape: f32[32,128], index: 0, kind: input, shape index: {}]   ;;  %s1292_s1 = inlined_call_operand.hbm [shape: f32[128,512], index: 1, kind: input, shape index: {}]   ;;  %s1293_s2 = inlined_call_operand.hbm [shape: f32[8,512], index: 2, kind: input, shape index: {}]   ;;  %s1294_s3 = inlined_call_operand.hbm [shape: f32[8,512], index: 3, kind: output, shape index: {0}]   ;;  %s1295_s4 = inlined_call_operand.hbm [shape: f32[8,512], index: 4, kind: output, shape index: {1}]  }
   0x1   :  { %1303 = sst [smem:[#allocation15_spill]] %s1292_s1 }
   0x2   :  { %10 = vsyncpa [#allocation3], 0 }
   0x3   :  { %11 = vsyncpa [#allocation6], 0 }
   0x4   :  { %13 = vsyncpa [#allocation6 + $0x1], 0 }
   0x5   :  { %14 = vsyncpa [#allocation4], 0 }
   0x6   :  { %16 = vsyncpa [#allocation4 + $0x1], 0 }
   0x7   :  { %17 = vsyncpa [#allocation10], 0 }
   0x8   :  { %19 = vsyncpa [#allocation10 + $0x1], 0  ;;  %s971_s15 = smov 0   ;;  %s973_s16 = smov 0  }
   0x9   :  { %s975_s17 = smov 0   ;;  %s977_s18 = smov 0  }
   0xa LB: > { %s992_s19 = sadd.s32 1, %s933_s18   ;;  %s53_s20 = sadd.s32 1, %s929_s17  ;;  %s933_s18 = sphi %s977_s18, %s1324_s18   ;;  %s929_s17 = sphi %s975_s17, %s1323_s17   ;;  %s925_s16 = sphi %s973_s16, %s1322_s16   ;;  %s921_s15 = sphi %s971_s15, %s1321_s15  }
   0xb   : > { %s50_s21 = ssub.s32 %s933_s18, %s992_s19  ;;  %p60_p0 = scmp.ne.s32.totalorder %s929_s17, %s925_s16 }
   0xc   : > { %p51_p1 = scmp.eq.s32.totalorder %s50_s21, 0  ;;  %p61_p2 = scmp.eq.s32.totalorder %s933_s18, 0 }
   0xd   : > { %p697_p4 = scmp.lt.s32.totalorder %s933_s18, 2  ;;  %s181_s23 = sand.u32 1, %s933_s18  }
   0xe   : > { %s1003_s22 = scalar_select %p51_p1, %s929_s17, %s53_s20  }
   0xf   : > { %p62_p5 = por %p61_p2, %p60_p0  ;;  %s183_s24 = sand.u32 1, %s929_s17  }
  0x10   : > { %s594_s25 = sshll.u32 %s183_s24, 8  ;;  %s614_s26 = sshll.u32 %s933_s18, 8 }
  0x11   : > { %s1304_s1 = sld [smem:[#allocation15_spill]]  ;;  %s185_s30 = scalar_lea.vmem [#allocation5], %s594_s25 }
  0x12   : > { %s192_s5 = sshll.u32 %s185_s30, 4  ;;  %p1020_p6 = pnand %p697_p4, %p62_p5  ;;  %s1024_s5 = int_to_ptr.vmem [resolvable:$true] %s192_s5 }
  0x13   : > { %s1026_s7 = scalar_lea.sflag [#allocation6], %s181_s23 }
  0x14   : > { %s1305_s6 = scalar_select %p1020_p6, 1, 0 }
  0x15   : > { %p1297_p8 = pneg %p1020_p6 }
  0x17   : > { %s1018_s29 = scalar_lea.hbm %s1304_s1, %s614_s26  ;;  %s748_s11 = scalar_lea.hbm %s1304_s1, 8192 }
  0x18   : > { %s743_s8 = scalar_lea.hbm %s1018_s29, 4096  ;;  %p749_p11 = scmp.lt.u32.totalorder %s1018_s29, %s1304_s1 }
  0x19   : > { %p744_p7 = scmp.ne.s32.totalorder %s1018_s29, %s743_s8  ;;  %p750_p12 = scmp.lt.u32.totalorder %s748_s11, %s743_s8 }
  0x1a   : > { %p752_p1 = scmp.lt.u32.totalorder %s743_s8, %s1018_s29 }
  0x1b   : > { %p746_p9 = pnand %p1297_p8, %p744_p7  ;;  %p751_p13 = por %p750_p12, %p749_p11 }
  0x1d   : > { %p747_p10 = pneg %p746_p9  ;;  %p753_p2 = por %p752_p1, %p751_p13 }
  0x1f   : > { %p754_p4 = pnand %p753_p2, %p747_p10 }
  0x21   : > { %757 = shalt.err (!%p754_p4)
}
  0x22   : > { %s758_s14 = scalar_lea.vmem %s1024_s5, 4096  ;;  %s935_s20 = smov [#allocation5]  }
  0x23   : > { %p759_p5 = scmp.ne.s32.totalorder %s1024_s5, %s758_s14  ;;  %s763_s21 = sshll.u32 %s935_s20, 4  ;;  %s764_s21 = int_to_ptr.vmem [resolvable:$false] %s763_s21 }
  0x24   : > { %s765_s23 = scalar_lea.vmem %s764_s21, 8192  ;;  %p766_p3 = scmp.lt.s32.totalorder %s1024_s5, %s764_s21 }
  0x25   : > { %p761_p7 = pnand %p759_p5, %p1297_p8  ;;  %p767_p11 = scmp.lt.s32.totalorder %s765_s23, %s758_s14 }
  0x27   : > { %p762_p9 = pneg %p761_p7  ;;  %p768_p12 = por %p767_p11, %p766_p3 }
  0x29   : > { %p769_p13 = pnand %p768_p12, %p762_p9 }
  0x2b   : > { %772 = shalt.err (!%p769_p13)
}
  0x2c   : > { %s936_s25 = smov 512   ;;  %s937_s27 = smov 256  }
  0x2d   : > { %s938_s28 = smov 16   ;;  %s1055_s30 = sadd.s32 4294967295, %s933_s18  }
  0x2e   : > { %685 = dma.hbm_to_vmem [thread:$0]  (!%p1020_p6), %s1018_s29, 4096, %s1024_s5, %s1026_s7, %s936_s25, %s937_s27, %s938_s28  }
  0x2f   : > { %s590_s8 = sadd.s32 4294967294, %s933_s18   ;;  %p66_p3 = scmp.ne.s32.totalorder %s925_s16, %s921_s15 }
  0x30   : > { %p1296_p10 = scmp.eq.s32.totalorder %s1055_s30, 0  ;;  %p116_p1 = scmp.eq.s32.totalorder %s1055_s30, 1 }
  0x31   : > { %p122_p2 = scmp.eq.s32.totalorder %s590_s8, 1  ;;  %p591_p4 = scmp.ge.s32.totalorder %s933_s18, 1 }
  0x32   : > { %p1065_p5 = por %p1296_p10, %p66_p3  ;;  %p1072_p7 = por %p116_p1, %p60_p0 }
  0x33   : > { %p1076_p9 = por %p122_p2, %p66_p3  ;;  %p155_p11 = scmp.lt.s32.totalorder %s933_s18, 3 }
  0x34   : > { %s1306_s9 = scalar_select %p1065_p5, 1, 0 }
  0x35   : > { %s1307_s29 = scalar_select %p1072_p7, 1, 0 }
  0x36   : > { %s1308_s5 = scalar_select %p1076_p9, 1, 0 }
  0x37   : > { %p1081_p12 = pnand %p591_p4, %p155_p11  ;;  %s939_s11 = smov [#allocation2]  }
  0x38   : > { %s167_s12 = sshll.u32 %s939_s11, 4  ;;  %s597_s13 = sshll.u32 %s183_s24, 4  ;;  %s1085_s12 = int_to_ptr.vmem [resolvable:$true] %s167_s12 }
  0x39   : > { %s1309_s10 = scalar_select %p1081_p12, 1, 0 }
  0x3a   : > { %p678_p13 = pneg %p1081_p12  ;;  %s1102_s23 = scalar_lea.hbm %s1293_s2, %s614_s26 }
  0x3b   : > { %s206_s25 = scalar_lea.vmem [#allocation7], %s597_s13  ;;  %s773_s24 = scalar_lea.hbm %s1291_s0, 512 }
  0x3c   : > { %p1093_p0 = pnand %p678_p13, %p1296_p10  ;;  %s214_s27 = sshll.u32 %s206_s25, 4  ;;  %s1104_s27 = int_to_ptr.vmem [resolvable:$true] %s214_s27 }
  0x3d   : > { %p774_p3 = scmp.ne.s32.totalorder %s1291_s0, %s773_s24  ;;  %p780_p11 = scmp.lt.u32.totalorder %s773_s24, %s1291_s0 }
  0x3e   : > { %p775_p1 = pneg %p1093_p0 }
  0x40   : > { %p776_p2 = pnand %p775_p1, %p774_p3 }
  0x42   : > { %p777_p4 = pneg %p776_p2 }
  0x44   : > { %p782_p13 = pnand %p780_p11, %p777_p4 }
  0x46   : > { %785 = shalt.err (!%p782_p13)
}
  0x47   : > { %s786_s26 = scalar_lea.vmem %s1085_s12, 512  ;;  %p794_p7 = scmp.lt.s32.totalorder %s1085_s12, %s1085_s12 }
  0x48   : > { %p787_p10 = scmp.ne.s32.totalorder %s1085_s12, %s786_s26  ;;  %p795_p5 = scmp.lt.s32.totalorder %s786_s26, %s786_s26 }
  0x4a   : > { %p789_p8 = pnand %p787_p10, %p775_p1  ;;  %p796_p12 = por %p795_p5, %p794_p7 }
  0x4c   : > { %p790_p9 = pneg %p789_p8 }
  0x4e   : > { %p797_p6 = pnand %p796_p12, %p790_p9 }
  0x50   : > { %800 = shalt.err (!%p797_p6)
}
  0x51   : > { %s940_s1 = smov 128   ;;  %s941_s13 = smov 8  }
  0x52   : > { %681 = dma.hbm_to_vmem [thread:$0]  (!%p1093_p0), %s1291_s0, 512, %s1085_s12, [#allocation3], %s940_s1, %s940_s1, %s941_s13  }
  0x53   : > { %s801_s8 = scalar_lea.hbm %s1102_s23, 256  ;;  %p1311_p10 = scmp.ne.s32.totalorder %s1305_s6, 0 }
  0x54   : > { %p802_p8 = scmp.ne.s32.totalorder %s1102_s23, %s801_s8  ;;  %s806_s20 = scalar_lea.hbm %s1293_s2, 512 }
  0x55   : > { %p1312_p5 = pneg %p1311_p10  ;;  %p807_p9 = scmp.lt.u32.totalorder %s1102_s23, %s1293_s2 }
  0x56   : > { %p808_p12 = scmp.lt.u32.totalorder %s806_s20, %s801_s8  ;;  %p810_p1 = scmp.lt.u32.totalorder %s801_s8, %s1102_s23 }
  0x57   : > { %p804_p7 = pnand %p802_p8, %p1312_p5 }
  0x58   : > { %p809_p3 = por %p808_p12, %p807_p9 }
  0x59   : > { %p805_p6 = pneg %p804_p7 }
  0x5a   : > { %p811_p2 = por %p810_p1, %p809_p3 }
  0x5c   : > { %p812_p4 = pnand %p811_p2, %p805_p6 }
  0x5e   : > { %815 = shalt.err (!%p812_p4)
}
  0x5f   : > { %s816_s12 = scalar_lea.vmem %s1104_s27, 256  ;;  %p1313_p11 = pmov %p1312_p5 }
  0x60   : > { %p817_p0 = scmp.ne.s32.totalorder %s1104_s27, %s816_s12  ;;  %s942_s14 = smov [#allocation7]  }
  0x61   : > { %s821_s1 = sshll.u32 %s942_s14, 4  ;;  %s822_s1 = int_to_ptr.vmem [resolvable:$false] %s821_s1 }
  0x62   : > { %p819_p13 = pnand %p817_p0, %p1313_p11  ;;  %s823_s13 = scalar_lea.vmem %s822_s1, 512 }
  0x63   : > { %p824_p5 = scmp.lt.s32.totalorder %s1104_s27, %s822_s1  ;;  %p825_p7 = scmp.lt.s32.totalorder %s823_s13, %s816_s12 }
  0x64   : > { %p820_p8 = pneg %p819_p13 }
  0x65   : > { %p826_p9 = por %p825_p7, %p824_p5 }
  0x67   : > { %p827_p12 = pnand %p826_p9, %p820_p8 }
  0x69   : > { %830 = shalt.err (!%p827_p12)
}
  0x6a   : > { %688 = dma.hbm_to_vmem [thread:$0]  (!%p1311_p10), %s1102_s23, 256, %s1104_s27, %s1026_s7  }
  0x6b   : > { %p1314_p6 = scmp.ne.s32.totalorder %s1309_s10, 0 }
  0x6c   : > { %p1315_p3 = scmp.eq.s32.totalorder (!%p1314_p6), %s1055_s30, 0 }
  0x6d   : > { %223 = sbr.rel (%p1314_p6) target bundleno = 416 (0x1a0), region = 32 }
  0x74   : > { %904 = dma.done.wait (%p1315_p3), [#allocation3], 512   ;;  %p1316_p1 = pmov %p1315_p3 }
  0x75   : > { %s229_s25 = sand.u32 1, %s1055_s30   ;;  %s1159_s28 = sand.u32 1, %s925_s16  }
  0x76   : > { %906 = vsyncadd (%p1316_p1), [#allocation3], 4294966784  ;;  %s602_s6 = sshll.u32 %s1159_s28, 8  ;;  %s230_s8 = scalar_lea.sflag [#allocation6], %s229_s25 }
  0x77   : > { %s1162_s24 = scalar_lea.vmem [#allocation5], %s602_s6  ;;  %p1317_p10 = scmp.ne.s32.totalorder %s1306_s9, 0 }
  0x79   : > { %908 = dma.done.wait (%p1317_p10), %s230_s8, 4352  }
  0x7a   : > { %910 = vsyncadd (%p1317_p10), %s230_s8, 4294962944  ;;  %v943_v0 = vmov 0.0   ;;  %v286_v1 = vld [vmem:[%s1162_s24 + $0x8] sm:$0xff]  ;;  %v288_v2 = vld [vmem:[%s1162_s24 + $0x18] sm:$0xff]  ;;  %s1205_s7 = sshll.u32 %s1159_s28, 4  ;;  %s616_s10 = sshll.u32 %s1055_s30, 8 }
  0x7b   : > { %381 = vmatprep.mubr.f32.mxu0 %v943_v0  ;;  %393 = vmatprep.mubr.f32.mxu1 %v943_v0  ;;  %v285_v3 = vld [vmem:[%s1162_s24] sm:$0xff]  ;;  %v618_v4 = vpack.c.bf16 %v288_v2, %v286_v1  ;;  %v287_v5 = vld [vmem:[%s1162_s24 + $0x10] sm:$0xff]  ;;  %v290_v6 = vld [vmem:[%s1162_s24 + $0x28] sm:$0xff]  ;;  %s242_s9 = scalar_lea.vmem [#allocation7], %s1205_s7  ;;  %s276_s23 = scalar_lea.vmem [#allocation9], %s1205_s7 }
  0x7c   : > { %v292_v7 = vld [vmem:[%s1162_s24 + $0x38] sm:$0xff]  ;;  %v620_v8 = vpack.c.bf16 %v287_v5, %v285_v3  ;;  %v289_v10 = vld [vmem:[%s1162_s24 + $0x20] sm:$0xff]  ;;  %v291_v11 = vld [vmem:[%s1162_s24 + $0x30] sm:$0xff]  ;;  %s456_s27 = sshll.u32 %s276_s23, 4  ;;  %s1215_s21 = scalar_lea.hbm %s1295_s4, %s616_s10  ;;  %s1217_s27 = int_to_ptr.vmem [resolvable:$true] %s456_s27 }
  0x7d   : > { %v622_v9 = vpack.c.bf16 %v292_v7, %v290_v6  ;;  %v294_v12 = vld [vmem:[%s1162_s24 + $0x48] sm:$0xff]  ;;  %619 = vmatprep.subr.bf16.mxu0 %v618_v4  ;;  %650 = vmatprep.subr.bf16.mxu1 %v618_v4  ;;  %v296_v13 = vld [vmem:[%s1162_s24 + $0x58] sm:$0xff]  ;;  %v624_v14 = vpack.c.bf16 %v291_v11, %v289_v10  ;;  %v293_v16 = vld [vmem:[%s1162_s24 + $0x40] sm:$0xff]  ;;  %s428_s26 = scalar_lea.sflag [#allocation10], %s1159_s28  ;;  %s831_s12 = scalar_lea.vmem %s1217_s27, 256 }
  0x7e   : > { %621 = vmatpush1.bf16.msra.mxu0 %v620_v8  ;;  %658 = vmatpush1.bf16.msra.mxu1 %v620_v8  ;;  %v626_v15 = vpack.c.bf16 %v296_v13, %v294_v12  ;;  %v295_v17 = vld [vmem:[%s1162_s24 + $0x50] sm:$0xff]  ;;  %v298_v18 = vld [vmem:[%s1162_s24 + $0x68] sm:$0xff]  ;;  %v300_v19 = vld [vmem:[%s1162_s24 + $0x78] sm:$0xff]  ;;  %p832_p2 = scmp.ne.s32.totalorder %s1217_s27, %s831_s12  ;;  %p1318_p4 = scmp.ne.s32.totalorder %s1307_s29, 0 }
  0x7f   : > { %623 = vmatprep.subr.bf16.mxu0 %v622_v9  ;;  %651 = vmatprep.subr.bf16.mxu1 %v622_v9  ;;  %v628_v20 = vpack.c.bf16 %v295_v17, %v293_v16  ;;  %v630_v21 = vpack.c.bf16 %v300_v19, %v298_v18  ;;  %v297_v22 = vld [vmem:[%s1162_s24 + $0x60] sm:$0xff]  ;;  %v299_v23 = vld [vmem:[%s1162_s24 + $0x70] sm:$0xff]  ;;  %v302_v24 = vld [vmem:[%s1162_s24 + $0x88] sm:$0xff]  ;;  %s944_s14 = smov [#allocation9]  }
  0x80   : > { %v304_v25 = vld [vmem:[%s1162_s24 + $0x98] sm:$0xff]  ;;  %v632_v26 = vpack.c.bf16 %v299_v23, %v297_v22  ;;  %v301_v28 = vld [vmem:[%s1162_s24 + $0x80] sm:$0xff]  ;;  %v303_v29 = vld [vmem:[%s1162_s24 + $0x90] sm:$0xff]  ;;  %p833_p0 = pnand %p832_p2, %p1318_p4  ;;  %s835_s1 = sshll.u32 %s944_s14, 4  ;;  %s836_s1 = int_to_ptr.vmem [resolvable:$false] %s835_s1 }
  0x81   : > { %v634_v27 = vpack.c.bf16 %v304_v25, %v302_v24  ;;  %v306_v30 = vld [vmem:[%s1162_s24 + $0xa8] sm:$0xff]  ;;  %v308_v31 = vld [vmem:[%s1162_s24 + $0xb8] sm:$0xff]  ;;  %v636_v32 = vpack.c.bf16 %v303_v29, %v301_v28  ;;  %v305_v34 = vld [vmem:[%s1162_s24 + $0xa0] sm:$0xff]  ;;  %s837_s13 = scalar_lea.vmem %s836_s1, 512  ;;  %p838_p13 = scmp.lt.s32.totalorder %s1217_s27, %s836_s1 }
  0x82   : > { %625 = vmatpush1.bf16.msra.mxu0 %v624_v14  ;;  %659 = vmatpush1.bf16.msra.mxu1 %v624_v14  ;;  %v638_v33 = vpack.c.bf16 %v308_v31, %v306_v30  ;;  %v307_v35 = vld [vmem:[%s1162_s24 + $0xb0] sm:$0xff]  ;;  %v310_v36 = vld [vmem:[%s1162_s24 + $0xc8] sm:$0xff]  ;;  %v312_v37 = vld [vmem:[%s1162_s24 + $0xd8] sm:$0xff]  ;;  %p834_p11 = pneg %p833_p0  ;;  %p839_p8 = scmp.lt.s32.totalorder %s837_s13, %s831_s12 }
  0x83   : > { %627 = vmatprep.subr.bf16.mxu0 %v626_v15  ;;  %652 = vmatprep.subr.bf16.mxu1 %v626_v15  ;;  %v640_v38 = vpack.c.bf16 %v307_v35, %v305_v34  ;;  %v642_v39 = vpack.c.bf16 %v312_v37, %v310_v36  ;;  %v309_v40 = vld [vmem:[%s1162_s24 + $0xc0] sm:$0xff]  ;;  %v311_v41 = vld [vmem:[%s1162_s24 + $0xd0] sm:$0xff]  ;;  %v314_v42 = vld [vmem:[%s1162_s24 + $0xe8] sm:$0xff] }
  0x84   : > { %v316_v43 = vld [vmem:[%s1162_s24 + $0xf8] sm:$0xff]  ;;  %v644_v44 = vpack.c.bf16 %v311_v41, %v309_v40  ;;  %v313_v46 = vld [vmem:[%s1162_s24 + $0xe0] sm:$0xff]  ;;  %v315_v47 = vld [vmem:[%s1162_s24 + $0xf0] sm:$0xff]  ;;  %p840_p5 = por %p839_p8, %p838_p13 }
  0x85   : > { %v646_v45 = vpack.c.bf16 %v316_v43, %v314_v42  ;;  %v648_v48 = vpack.c.bf16 %v315_v47, %v313_v46  ;;  %v281_v49 = vld [vmem:[#allocation2] sm:$0xff]  ;;  %v283_v50 = vld [vmem:[#allocation2 + $0x10] sm:$0xff]  ;;  %v282_v51 = vld [vmem:[#allocation2 + $0x8] sm:$0xff] }
  0x86   : > { %629 = vmatpush1.bf16.msra.mxu0 %v628_v20  ;;  %660 = vmatpush1.bf16.msra.mxu1 %v628_v20  ;;  %v284_v52 = vld [vmem:[#allocation2 + $0x18] sm:$0xff]  ;;  %v406_v59 = vld [vmem:[%s242_s9] sm:$0xff]  ;;  %p841_p7 = pnand %p840_p5, %p834_p11 }
  0x87   : > { %631 = vmatprep.subr.bf16.mxu0 %v630_v21  ;;  %653 = vmatprep.subr.bf16.mxu1 %v630_v21  ;;  %v407_v60 = vld [vmem:[%s242_s9 + $0x8] sm:$0xff] }
  0x8a   : > { %633 = vmatpush1.bf16.msra.mxu0 %v632_v26  ;;  %661 = vmatpush1.bf16.msra.mxu1 %v632_v26 }
  0x8b   : > { %635 = vmatprep.subr.bf16.mxu0 %v634_v27  ;;  %654 = vmatprep.subr.bf16.mxu1 %v634_v27 }
  0x8e   : > { %637 = vmatpush1.bf16.msra.mxu0 %v636_v32  ;;  %662 = vmatpush1.bf16.msra.mxu1 %v636_v32 }
  0x8f   : > { %639 = vmatprep.subr.bf16.mxu0 %v638_v33  ;;  %655 = vmatprep.subr.bf16.mxu1 %v638_v33 }
  0x92   : > { %641 = vmatpush1.bf16.msra.mxu0 %v640_v38  ;;  %663 = vmatpush1.bf16.msra.mxu1 %v640_v38 }
  0x93   : > { %643 = vmatprep.subr.bf16.mxu0 %v642_v39  ;;  %656 = vmatprep.subr.bf16.mxu1 %v642_v39 }
  0x96   : > { %645 = vmatpush1.bf16.msra.mxu0 %v644_v44  ;;  %664 = vmatpush1.bf16.msra.mxu1 %v644_v44 }
  0x97   : > { %647 = vmatprep.subr.bf16.mxu0 %v646_v45  ;;  %657 = vmatprep.subr.bf16.mxu1 %v646_v45 }
  0x9a   : > { %649 = vmatpush1.bf16.msra.mxu0 %v648_v48  ;;  %665 = vmatpush1.bf16.msra.mxu1 %v648_v48 }
  0x9d   : > { %382 = vmatmul.mubr.f32.vlgmr.msra.gmra.mrb[0].mxu0 %v281_v49  ;;  %394 = vmatmul.mubr.f32.vlgmr.msra.gmra.mrb[0].mxu1 %v283_v50 }
  0x9e   : > { %387 = vmatprep.mubr.f32.mxu0 %v943_v0  ;;  %399 = vmatprep.mubr.f32.mxu1 %v943_v0 }
  0xa1   : > { %388 = vmatmul.mubr.f32.gmra.mrb[2].mxu0 %v282_v51  ;;  %400 = vmatmul.mubr.f32.gmra.mrb[2].mxu1 %v284_v52 }
 0x170   : > { %v383_v53 = vpop.f32.mrb[0].mxu0  ;;  %v395_v54 = vpop.f32.mrb[0].mxu1 }
 0x171   : > { %v410_v55 = vmul.f32 %v395_v54, %v383_v53  ;;  %v385_v56 = vpop.f32.mrb[1].mxu0  ;;  %v397_v57 = vpop.f32.mrb[1].mxu1 }
 0x172   : > { %v411_v58 = vmul.f32 %v397_v57, %v385_v56 }
 0x174   : > { %v389_v61 = vpop.f32.mrb[2].mxu0  ;;  %v401_v62 = vpop.f32.mrb[2].mxu1 }
 0x175   : > { %v408_v63 = vmul.f32 %v406_v59, %v389_v61  ;;  %v391_v0 = vpop.f32.mrb[3].mxu0  ;;  %v403_v1 = vpop.f32.mrb[3].mxu1 }
 0x176   : > { %v409_v2 = vmul.f32 %v407_v60, %v391_v0 }
 0x177   : > { %v412_v3 = vadd.f32 %v410_v55, %v408_v63 }
 0x178   : > { %v413_v4 = vadd.f32 %v411_v58, %v409_v2 }
 0x179   : > { %739 = vtanh.f32 %v412_v3  ;;  %418 = vst [vmem:[%s276_s23] sm:$0xff] %v412_v3 }
 0x17a   : > { %741 = vtanh.f32 %v413_v4  ;;  %419 = vst [vmem:[%s276_s23 + $0x8] sm:$0xff] %v413_v4 }
 0x17b   : > { %844 = shalt.err (!%p841_p7)
}
 0x17c   : > { %s845_s25 = scalar_lea.hbm %s1215_s21, 256  ;;  %s849_s24 = scalar_lea.hbm %s1295_s4, 512 }
 0x17d   : > { %p846_p9 = scmp.ne.s32.totalorder %s1215_s21, %s845_s25  ;;  %p850_p3 = scmp.lt.u32.totalorder %s1215_s21, %s1295_s4 }
 0x17e   : > { %p851_p1 = scmp.lt.u32.totalorder %s849_s24, %s845_s25  ;;  %p853_p2 = scmp.lt.u32.totalorder %s845_s25, %s1215_s21 }
 0x17f   : > { %p847_p12 = pnand %p846_p9, %p1318_p4 }
 0x180   : > { %p852_p10 = por %p851_p1, %p850_p3 }
 0x181   : > { %p848_p6 = pneg %p847_p12 }
 0x182   : > { %p854_p0 = por %p853_p2, %p852_p10 }
 0x184   : > { %p855_p11 = pnand %p854_p0, %p848_p6 }
 0x186   : > { %858 = shalt.err (!%p855_p11)
}
 0x187   : > { %675 = dma.vmem_to_hbm [thread:$0]  (%p1318_p4), %s1217_s27, 256, %s1215_s21, %s428_s26   ;;  %v740_v5 = vpop.eup %739 }
 0x188   : > { %s269_s11 = scalar_lea.vmem [#allocation8], %s1205_s7  ;;  %v742_v6 = vpop.eup %741  ;;  %v416_v7 = vmul.f32 %v740_v5, %v401_v62  ;;  %s1247_s1 = scalar_lea.hbm %s1294_s3, %s616_s10 }
 0x189   : > { %s442_s20 = sshll.u32 %s269_s11, 4  ;;  %v417_v8 = vmul.f32 %v742_v6, %v403_v1  ;;  %s423_s27 = scalar_lea.sflag [#allocation4], %s1159_s28  ;;  %s1249_s20 = int_to_ptr.vmem [resolvable:$true] %s442_s20 }
 0x18a   : > { %420 = vst [vmem:[%s269_s11] sm:$0xff] %v416_v7  ;;  %s859_s7 = scalar_lea.vmem %s1249_s20, 256  ;;  %s945_s21 = smov [#allocation8]  }
 0x18b   : > { %421 = vst [vmem:[%s269_s11 + $0x8] sm:$0xff] %v417_v8  ;;  %p860_p13 = scmp.ne.s32.totalorder %s1249_s20, %s859_s7  ;;  %s863_s30 = sshll.u32 %s945_s21, 4  ;;  %s864_s30 = int_to_ptr.vmem [resolvable:$false] %s863_s30 }
 0x18c   : > { %s865_s26 = scalar_lea.vmem %s864_s30, 512  ;;  %p866_p7 = scmp.lt.s32.totalorder %s1249_s20, %s864_s30 }
 0x18d   : > { %p861_p8 = pnand %p860_p13, %p1318_p4  ;;  %p867_p9 = scmp.lt.s32.totalorder %s865_s26, %s859_s7 }
 0x18f   : > { %p862_p5 = pneg %p861_p8  ;;  %p868_p12 = por %p867_p9, %p866_p7 }
 0x191   : > { %p869_p6 = pnand %p868_p12, %p862_p5 }
 0x193   : > { %872 = shalt.err (!%p869_p6)
}
 0x194   : > { %s873_s28 = scalar_lea.hbm %s1247_s1, 256  ;;  %s877_s25 = scalar_lea.hbm %s1294_s3, 512 }
 0x195   : > { %p874_p3 = scmp.ne.s32.totalorder %s1247_s1, %s873_s28  ;;  %p878_p2 = scmp.lt.u32.totalorder %s1247_s1, %s1294_s3 }
 0x196   : > { %p879_p0 = scmp.lt.u32.totalorder %s877_s25, %s873_s28  ;;  %p881_p13 = scmp.lt.u32.totalorder %s873_s28, %s1247_s1 }
 0x197   : > { %p875_p1 = pnand %p874_p3, %p1318_p4 }
 0x198   : > { %p880_p11 = por %p879_p0, %p878_p2 }
 0x199   : > { %p876_p10 = pneg %p875_p1 }
 0x19a   : > { %p882_p8 = por %p881_p13, %p880_p11 }
 0x19c   : > { %p883_p5 = pnand %p882_p8, %p876_p10 }
 0x19e   : > { %886 = shalt.err (!%p883_p5)
}
 0x19f   : > { %674 = dma.vmem_to_hbm [thread:$0]  (%p1318_p4), %s1249_s20, 256, %s1247_s1, %s423_s27  }
 0x1a0 PF: > { %s468_s24 = sand.u32 1, %s921_s15   ;;  %p1319_p7 = scmp.ne.s32.totalorder %s1308_s5, 0 }
 0x1a1   : > { %p1320_p9 = scmp.ge.s32.totalorder %s933_s18, 2  ;;  %s469_s9 = scalar_lea.sflag [#allocation4], %s468_s24 }
 0x1a3   : > { %p690_p12 = pnand %p1320_p9, %p1319_p7 }
 0x1a5   : > { %912 = dma.done.wait (!%p690_p12), %s469_s9, 256  }
 0x1a6   : > { %914 = vsyncadd (!%p690_p12), %s469_s9, 4294967040  ;;  %s478_s23 = scalar_lea.sflag [#allocation10], %s468_s24 }
 0x1a7   : > { %916 = dma.done.wait (!%p690_p12), %s478_s23, 256  }
 0x1a8   : > { %918 = vsyncadd (!%p690_p12), %s478_s23, 4294967040  ;;  %p22_p4 = scmp.ge.s32.totalorder %s992_s19, 4   ;;  %s1321_s15 = smov %s925_s16 }
 0x1a9   : > { %s1322_s16 = smov %s929_s17  ;;  %s1323_s17 = smov %s1003_s22 }
 0x1aa   : > { %s1324_s18 = smov %s992_s19  ;;  %24 = sbr.rel (!%p22_p4) target bundleno = 10 (0xa), region = 110 }
 0x1b1   :  { %483 = vsyncpa [#allocation3], 1 }
 0x1b2   :  { %485 = vsyncpa [#allocation3 + $0x1], 1 }
 0x1b3   :  { %486 = vsyncpa [#allocation6], 1 }
 0x1b4   :  { %488 = vsyncpa [#allocation6 + $0x1], 1 }
 0x1b5   :  { %489 = vsyncpa [#allocation4], 1 }
 0x1b6   :  { %491 = vsyncpa [#allocation4 + $0x1], 1 }
 0x1b7   :  { %492 = vsyncpa [#allocation10], 1 }
 0x1b8   :  { %494 = vsyncpa [#allocation10 + $0x1], 1 }

</bundles_post_ra>
